<compile_context>
chip_gen: v7x
topology: tpu7x:2x2x1
jax: 0.10.0
libtpu: 0.0.40
codegen_flags: <defaults>
</compile_context>

<pallas_src>
import jax
import jax.numpy as jnp
from jax import lax
from jax.experimental import pallas as pl
from jax.experimental.pallas import tpu as pltpu

EPS = 1e-5
COMPUTE_DTYPE = jnp.bfloat16   # MXU-native path on v5e/v6e/v7x
STORE_DTYPE = jnp.bfloat16     # dtype of the z1/z2 HBM intermediates


def _store_stats(acc, stat_ref, inv_count):
    """Per-lane (w,c)-group mean and M2 over the flattened NB*H row axis."""
    mean_g = jnp.sum(acc, axis=0, keepdims=True) * inv_count        # (1, W*C)
    m2_g = jnp.sum((acc - mean_g) ** 2, axis=0, keepdims=True)      # (1, W*C)
    # Two direct sub-slice stores (no sublane-axis concatenate relayout).
    stat_ref[0, 0:1, :] = mean_g
    stat_ref[0, 1:2, :] = m2_g


def conv1_kernel(xp_ref, b1_ref, z1_ref, stat_ref):
    """Conv1 for NB images + partial BN1 statistics.

    xp_ref  : (NB, H+2, W*Cin)    bf16 row-zero-padded input (lane = w*Cin+ci)
    b1_ref  : (3, W*Cin, W*Cout)  bf16 banded conv1 weights (one band per kh)
    z1_ref  : (NB, H, W*Cout)     bf16 raw conv1 output
    stat_ref: (1, 2, W*Cout)      f32 [per-(w,c) mean over NB*H rows, M2]
    """
    nb, h, wcout = z1_ref.shape
    wcin = xp_ref.shape[2]
    # Three banded matmuls with M = NB*H (batch folded into the M dimension).
    lhs0 = xp_ref[:, 0:h, :].reshape(nb * h, wcin)
    acc = jnp.dot(lhs0, b1_ref[0], preferred_element_type=jnp.float32)
    for kh in (1, 2):
        lhs = xp_ref[:, kh:kh + h, :].reshape(nb * h, wcin)
        acc = acc + jnp.dot(lhs, b1_ref[kh], preferred_element_type=jnp.float32)
    z1_ref[...] = acc.reshape(nb, h, wcout).astype(z1_ref.dtype)
    _store_stats(acc, stat_ref, 1.0 / (nb * h))


def conv2_kernel(z1_ref, s1_ref, t1_ref, b2_ref, z2_ref, stat_ref, ypad_ref):
    """BN1 + ReLU + conv2 for NB images + partial BN2 statistics.

    z1_ref  : (NB, H, W*Cout)     bf16 raw conv1 output
    s1_ref  : (1, W*Cout)         f32 BN1 scale (gamma/sqrt(var+eps)), lane-tiled
    t1_ref  : (1, W*Cout)         f32 BN1 shift (beta - mean*scale), lane-tiled
    b2_ref  : (3, W*Cout, W*Cout) bf16 banded conv2 weights
    z2_ref  : (NB, H, W*Cout)     bf16 raw conv2 output
    stat_ref: (1, 2, W*Cout)      f32
    ypad_ref: (NB, H+2, W*Cout)   f32 VMEM scratch, row-halo-padded BN1 output
                                  (kept f32 to avoid packed-dtype sub-sublane
                                  RMW stores on the halo rows; the band LHS is
                                  cast to bf16 right before each matmul)
    """
    nb, h, wc = z1_ref.shape
    y1 = jnp.maximum(z1_ref[...].astype(jnp.float32) * s1_ref[...] + t1_ref[...],
                     0.0)                                            # (NB, H, WC)
    # Zero only the two halo rows; the interior is overwritten right after.
    ypad_ref[:, 0:1, :] = jnp.zeros((nb, 1, wc), ypad_ref.dtype)
    ypad_ref[:, h + 1:h + 2, :] = jnp.zeros((nb, 1, wc), ypad_ref.dtype)
    ypad_ref[:, 1:h + 1, :] = y1
    lhs0 = ypad_ref[:, 0:h, :].astype(COMPUTE_DTYPE).reshape(nb * h, wc)
    acc = jnp.dot(lhs0, b2_ref[0], preferred_element_type=jnp.float32)
    for kh in (1, 2):
        lhs = ypad_ref[:, kh:kh + h, :].astype(COMPUTE_DTYPE).reshape(nb * h, wc)
        acc = acc + jnp.dot(lhs, b2_ref[kh], preferred_element_type=jnp.float32)
    z2_ref[...] = acc.reshape(nb, h, wc).astype(z2_ref.dtype)
    _store_stats(acc, stat_ref, 1.0 / (nb * h))


def _band_matrices(w_oihw, W):
    """(Cout, Cin, 3, 3) OIHW weight -> (3, W*Cin, W*Cout) banded matrices.

    Band kh realizes the width-axis 1-D conv for kernel row kh on rows
    flattened as lane index w*C + c; 'same' zero padding along W is folded
    into the band structure (out-of-range taps have no entry).
    """
    Cout, Cin, KH, KW = w_oihw.shape
    taps = jnp.transpose(w_oihw, (2, 3, 1, 0)).astype(jnp.float32)  # (KH,KW,Cin,Cout)
    src = jnp.arange(W)[:, None]          # input column
    dst = jnp.arange(W)[None, :]          # output column
    kw = src - dst + 1                    # tap linking src -> dst
    valid = (kw >= 0) & (kw < KW)
    kw_c = jnp.clip(kw, 0, KW - 1)
    mats = []
    for kh in range(KH):
        t = taps[kh][kw_c]                                   # (W, W, Cin, Cout)
        t = jnp.where(valid[:, :, None, None], t, 0.0)
        mats.append(jnp.transpose(t, (0, 2, 1, 3)).reshape(W * Cin, W * Cout))
    return jnp.stack(mats)


def _combine_stats(stat, count, W):
    """Chan parallel-variance combine of per-(block, column) group stats.

    stat: (G, 2, W*C); each of the G*W lane-groups summarizes `count` samples.
    """
    C = stat.shape[-1] // W
    mean_g = stat[:, 0, :].reshape(-1, C)                    # (G*W, C)
    m2_g = stat[:, 1, :].reshape(-1, C)
    mean = jnp.mean(mean_g, axis=0)
    m2 = jnp.sum(m2_g, axis=0) + count * jnp.sum((mean_g - mean) ** 2, axis=0)
    var = m2 / (mean_g.shape[0] * count)  # biased variance (BatchNorm forward)
    return mean, var


def _pick_nb(n, h):
    """Images per grid step.  Prefer M = nb*h >= 256 (fills the 256-deep MXU on
    v6e/v7x) using the smallest such nb, which also keeps the most grid steps
    (pipelining / v7x megacore needs several steps per TensorCore).  For tiny N
    both cannot hold; fall back to the largest feasible block."""
    divisors = [d for d in range(1, n + 1) if n % d == 0 and d * h <= 1024]
    for d in divisors:
        if d * h >= 256:
            return d
    return divisors[-1]


def double_convolution(x_nchw, w1, g1, b1, w2, g2, b2):
    """x_nchw: (N, Cin, H, W); w*: OIHW; g*/b*: (Cout,).  Returns NCHW."""
    N, Cin, H, W = x_nchw.shape
    Cout = w1.shape[0]
    WCin, WCout = W * Cin, W * Cout
    NB = _pick_nb(N, H)
    G = N // NB

    # Guard the banded-weight VMEM footprint (v7x has 64 MiB physical VMEM);
    # leave room for double-buffered activation blocks.
    band_bytes = 3 * (WCin + WCout) * WCout * 2   # bf16 B1 + B2
    assert band_bytes < 40 * 1024 * 1024, (
        "banded conv weights too large for VMEM; use a C-on-lane + row-tiling "
        "layout for this config")

    # glue: lane-dense row layout (lane = w*C + c), one-row zero halo in H.
    # XLA fuses the transpose + reshape + pad + bf16 cast into one memory pass.
    x_rows = jnp.transpose(x_nchw, (0, 2, 3, 1)).reshape(N, H, WCin)
    xp = jnp.pad(x_rows, ((0, 0), (1, 1), (0, 0))).astype(COMPUTE_DTYPE)
    B1 = _band_matrices(w1, W).astype(COMPUTE_DTYPE)   # (3, W*Cin,  W*Cout)
    B2 = _band_matrices(w2, W).astype(COMPUTE_DTYPE)   # (3, W*Cout, W*Cout)

    cparams = pltpu.CompilerParams(
        dimension_semantics=("parallel",),          # megacore split on v7x
        vmem_limit_bytes=48 * 1024 * 1024)          # under v7x's 64 MiB physical

    # ---- pass 1: conv1 + partial BN1 stats ----
    z1, stat1 = pl.pallas_call(
        conv1_kernel,
        grid_spec=pltpu.PrefetchScalarGridSpec(
            num_scalar_prefetch=0,
            grid=(G,),
            in_specs=[
                pl.BlockSpec((NB, H + 2, WCin), lambda g: (g, 0, 0)),
                pl.BlockSpec((3, WCin, WCout), lambda g: (0, 0, 0)),
            ],
            out_specs=[
                pl.BlockSpec((NB, H, WCout), lambda g: (g, 0, 0)),
                pl.BlockSpec((1, 2, WCout), lambda g: (g, 0, 0)),
            ]),
        out_shape=[
            jax.ShapeDtypeStruct((N, H, WCout), STORE_DTYPE),
            jax.ShapeDtypeStruct((G, 2, WCout), jnp.float32),
        ],
        compiler_params=cparams,
    )(xp, B1)

    mean1, var1 = _combine_stats(stat1, NB * H, W)
    s1 = (g1 / jnp.sqrt(var1 + EPS)).astype(jnp.float32)
    t1 = (b1 - mean1 * s1).astype(jnp.float32)
    s1row = jnp.tile(s1, W).reshape(1, WCout)
    t1row = jnp.tile(t1, W).reshape(1, WCout)

    # ---- pass 2: BN1 + ReLU + conv2 + partial BN2 stats ----
    z2, stat2 = pl.pallas_call(
        conv2_kernel,
        grid_spec=pltpu.PrefetchScalarGridSpec(
            num_scalar_prefetch=0,
            grid=(G,),
            in_specs=[
                pl.BlockSpec((NB, H, WCout), lambda g: (g, 0, 0)),
                pl.BlockSpec((1, WCout), lambda g: (0, 0)),
                pl.BlockSpec((1, WCout), lambda g: (0, 0)),
                pl.BlockSpec((3, WCout, WCout), lambda g: (0, 0, 0)),
            ],
            out_specs=[
                pl.BlockSpec((NB, H, WCout), lambda g: (g, 0, 0)),
                pl.BlockSpec((1, 2, WCout), lambda g: (g, 0, 0)),
            ],
            scratch_shapes=[pltpu.VMEM((NB, H + 2, WCout), jnp.float32)]),
        out_shape=[
            jax.ShapeDtypeStruct((N, H, WCout), STORE_DTYPE),
            jax.ShapeDtypeStruct((G, 2, WCout), jnp.float32),
        ],
        compiler_params=cparams,
    )(z1, s1row, t1row, B2)

    mean2, var2 = _combine_stats(stat2, NB * H, W)
    s2 = (g2 / jnp.sqrt(var2 + EPS)).astype(jnp.float32)
    t2 = (b2 - mean2 * s2).astype(jnp.float32)

    # ---- BN2 + ReLU epilogue: plain jnp so XLA fuses it with the
    # NHWC -> NCHW output transpose into a single memory pass. ----
    y2 = z2.astype(jnp.float32).reshape(N, H, W, Cout)
    out = jnp.maximum(y2 * s2 + t2, 0.0)
    return jnp.transpose(out, (0, 3, 1, 2)).astype(x_nchw.dtype)


def reference(x_nchw, w1, g1, b1, w2, g2, b2):
    """Pure-JAX reference (matches PyTorch training-mode forward)."""
    def conv(x, w):
        return lax.conv_general_dilated(
            x, w, window_strides=(1, 1), padding=((1, 1), (1, 1)),
            dimension_numbers=("NCHW", "OIHW", "NCHW"))

    def bn_relu(x, g, b):
        mean = jnp.mean(x, axis=(0, 2, 3), keepdims=True)
        var = jnp.mean((x - mean) ** 2, axis=(0, 2, 3), keepdims=True)
        y = (x - mean) / jnp.sqrt(var + EPS)
        y = y * g.reshape(1, -1, 1, 1) + b.reshape(1, -1, 1, 1)
        return jnp.maximum(y, 0.0)

    y = bn_relu(conv(x_nchw, w1), g1, b1)
    return bn_relu(conv(y, w2), g2, b2)


if __name__ == "__main__":
    key = jax.random.PRNGKey(0)
    N, Cin, Cout, H, W = 2, 4, 8, 16, 16

    k = jax.random.split(key, 7)
    x = jax.random.normal(k[0], (N, Cin, H, W), jnp.float32)
    # deterministic synthetic parameters (shapes from nn.Conv2d / nn.BatchNorm2d)
    w1 = 0.1 * jax.random.normal(k[1], (Cout, Cin, 3, 3), jnp.float32)
    w2 = 0.1 * jax.random.normal(k[2], (Cout, Cout, 3, 3), jnp.float32)
    g1 = 1.0 + 0.1 * jax.random.normal(k[3], (Cout,), jnp.float32)
    b1 = 0.1 * jax.random.normal(k[4], (Cout,), jnp.float32)
    g2 = 1.0 + 0.1 * jax.random.normal(k[5], (Cout,), jnp.float32)
    b2 = 0.1 * jax.random.normal(k[6], (Cout,), jnp.float32)

    out = jax.jit(double_convolution)(x, w1, g1, b1, w2, g2, b2)
    out = jax.block_until_ready(out)

    ref = jax.block_until_ready(reference(x, w1, g1, b1, w2, g2, b2))
    assert out.shape == (N, Cout, H, W)
    # bf16 matmul operands + bf16 z1/z2 intermediates -> rounding-level
    # differences vs. the f32 reference; tolerance still catches any
    # structural (band / padding / BN-statistics) bug, which is O(1).
    assert jnp.allclose(out, ref, atol=7.5e-2, rtol=5e-2), float(
        jnp.max(jnp.abs(out - ref)))

    print("KERNEL_OK")
</pallas_src>

<mosaic_0001>
module attributes {stable_mosaic.version = 11 : i64} {
  func.func @conv1_kernel(%arg0: i32, %arg1: memref<2x18x64xbf16, #tpu.memory_space<vmem>>, %arg2: memref<3x64x128xbf16, #tpu.memory_space<vmem>>, %arg3: memref<2x16x128xbf16, #tpu.memory_space<vmem>>, %arg4: memref<1x2x128xf32, #tpu.memory_space<vmem>>) attributes {dimension_semantics = [#tpu.dimension_semantics<parallel>], iteration_bounds = array<i64: 1>, scalar_prefetch = 0 : i64, scratch_operands = 0 : i64, tpu.core_type = #tpu.core_type<tc>, window_params = [{transform_indices = @transform_0, window_bounds = array<i64: 2, 18, 64>}, {pipeline_mode = #tpu.pipeline_mode<synchronous>, transform_indices = @transform_1, window_bounds = array<i64: 3, 64, 128>}, {transform_indices = @transform_2, window_bounds = array<i64: 2, 16, 128>}, {transform_indices = @transform_3, window_bounds = array<i64: 1, 2, 128>}]} {
    %c0 = arith.constant 0 : index
    %c0_0 = arith.constant 0 : index
    %c0_1 = arith.constant 0 : index
    %0 = vector.load %arg1[%c0, %c0_0, %c0_1] : memref<2x18x64xbf16, #tpu.memory_space<vmem>>, vector<2x16x64xbf16>
    %1 = vector.shape_cast %0 : vector<2x16x64xbf16> to vector<32x64xbf16>
    %c0_2 = arith.constant 0 : index
    %c0_3 = arith.constant 0 : index
    %c0_4 = arith.constant 0 : index
    %2 = vector.load %arg2[%c0_2, %c0_3, %c0_4] : memref<3x64x128xbf16, #tpu.memory_space<vmem>>, vector<1x64x128xbf16>
    %3 = vector.shape_cast %2 : vector<1x64x128xbf16> to vector<64x128xbf16>
    %cst = arith.constant dense<0.000000e+00> : vector<32x128xf32>
    %4 = tpu.matmul %1, %3, %cst {dimension_numbers = #tpu.dot_dimension_numbers<[1], [0], [0], [1], [0, 0, 1, 1], [], []>} : vector<32x64xbf16>, vector<64x128xbf16>, vector<32x128xf32> -> vector<32x128xf32>
    %c0_5 = arith.constant 0 : index
    %c1 = arith.constant 1 : index
    %c0_6 = arith.constant 0 : index
    %5 = vector.load %arg1[%c0_5, %c1, %c0_6] : memref<2x18x64xbf16, #tpu.memory_space<vmem>>, vector<2x16x64xbf16>
    %6 = vector.shape_cast %5 : vector<2x16x64xbf16> to vector<32x64xbf16>
    %c1_7 = arith.constant 1 : index
    %c0_8 = arith.constant 0 : index
    %c0_9 = arith.constant 0 : index
    %7 = vector.load %arg2[%c1_7, %c0_8, %c0_9] : memref<3x64x128xbf16, #tpu.memory_space<vmem>>, vector<1x64x128xbf16>
    %8 = vector.shape_cast %7 : vector<1x64x128xbf16> to vector<64x128xbf16>
    %cst_10 = arith.constant dense<0.000000e+00> : vector<32x128xf32>
    %9 = tpu.matmul %6, %8, %cst_10 {dimension_numbers = #tpu.dot_dimension_numbers<[1], [0], [0], [1], [0, 0, 1, 1], [], []>} : vector<32x64xbf16>, vector<64x128xbf16>, vector<32x128xf32> -> vector<32x128xf32>
    %10 = arith.addf %4, %9 : vector<32x128xf32>
    %c0_11 = arith.constant 0 : index
    %c2 = arith.constant 2 : index
    %c0_12 = arith.constant 0 : index
    %11 = vector.load %arg1[%c0_11, %c2, %c0_12] : memref<2x18x64xbf16, #tpu.memory_space<vmem>>, vector<2x16x64xbf16>
    %12 = vector.shape_cast %11 : vector<2x16x64xbf16> to vector<32x64xbf16>
    %c2_13 = arith.constant 2 : index
    %c0_14 = arith.constant 0 : index
    %c0_15 = arith.constant 0 : index
    %13 = vector.load %arg2[%c2_13, %c0_14, %c0_15] : memref<3x64x128xbf16, #tpu.memory_space<vmem>>, vector<1x64x128xbf16>
    %14 = vector.shape_cast %13 : vector<1x64x128xbf16> to vector<64x128xbf16>
    %cst_16 = arith.constant dense<0.000000e+00> : vector<32x128xf32>
    %15 = tpu.matmul %12, %14, %cst_16 {dimension_numbers = #tpu.dot_dimension_numbers<[1], [0], [0], [1], [0, 0, 1, 1], [], []>} : vector<32x64xbf16>, vector<64x128xbf16>, vector<32x128xf32> -> vector<32x128xf32>
    %16 = arith.addf %10, %15 : vector<32x128xf32>
    %17 = vector.shape_cast %16 : vector<32x128xf32> to vector<2x16x128xf32>
    %18 = arith.truncf %17 : vector<2x16x128xf32> to vector<2x16x128xbf16>
    %c0_17 = arith.constant 0 : index
    %c0_18 = arith.constant 0 : index
    %c0_19 = arith.constant 0 : index
    %19 = vector.load %arg3[%c0_17, %c0_18, %c0_19] : memref<2x16x128xbf16, #tpu.memory_space<vmem>>, vector<2x16x128xbf16>
    tpu.vector_store %arg3[%c0_17, %c0_18, %c0_19], %18 {strides = array<i32>} : memref<2x16x128xbf16, #tpu.memory_space<vmem>>, vector<2x16x128xbf16>,
    %cst_20 = arith.constant dense<0.000000e+00> : vector<128xf32>
    %20 = vector.multi_reduction <add>, %16, %cst_20 [0] : vector<32x128xf32> to vector<128xf32>
    %21 = vector.shape_cast %20 : vector<128xf32> to vector<1x128xf32>
    %cst_21 = arith.constant 3.125000e-02 : f32
    %22 = vector.broadcast %cst_21 : f32 to vector<1x128xf32>
    %23 = arith.mulf %21, %22 : vector<1x128xf32>
    %24 = vector.broadcast %23 : vector<1x128xf32> to vector<32x128xf32>
    %25 = arith.subf %16, %24 : vector<32x128xf32>
    %26 = arith.mulf %25, %25 : vector<32x128xf32>
    %cst_22 = arith.constant dense<0.000000e+00> : vector<128xf32>
    %27 = vector.multi_reduction <add>, %26, %cst_22 [0] : vector<32x128xf32> to vector<128xf32>
    %28 = vector.shape_cast %27 : vector<128xf32> to vector<1x128xf32>
    %c0_23 = arith.constant 0 : index
    %c0_24 = arith.constant 0 : index
    %c0_25 = arith.constant 0 : index
    %29 = vector.load %arg4[%c0_23, %c0_24, %c0_25] : memref<1x2x128xf32, #tpu.memory_space<vmem>>, vector<1x1x128xf32>
    %30 = vector.shape_cast %29 : vector<1x1x128xf32> to vector<1x128xf32>
    %31 = vector.shape_cast %23 : vector<1x128xf32> to vector<1x1x128xf32>
    tpu.vector_store %arg4[%c0_23, %c0_24, %c0_25], %31 {strides = array<i32>} : memref<1x2x128xf32, #tpu.memory_space<vmem>>, vector<1x1x128xf32>,
    %c0_26 = arith.constant 0 : index
    %c1_27 = arith.constant 1 : index
    %c0_28 = arith.constant 0 : index
    %32 = vector.load %arg4[%c0_26, %c1_27, %c0_28] : memref<1x2x128xf32, #tpu.memory_space<vmem>>, vector<1x1x128xf32>
    %33 = vector.shape_cast %32 : vector<1x1x128xf32> to vector<1x128xf32>
    %34 = vector.shape_cast %28 : vector<1x128xf32> to vector<1x1x128xf32>
    tpu.vector_store %arg4[%c0_26, %c1_27, %c0_28], %34 {strides = array<i32>} : memref<1x2x128xf32, #tpu.memory_space<vmem>>, vector<1x1x128xf32>,
    return
  }
  func.func @transform_0(%arg0: i32) -> (i32, i32, i32) {
    %c0_i32 = arith.constant 0 : i32
    %c0_i32_0 = arith.constant 0 : i32
    %c0_i32_1 = arith.constant 0 : i32
    return %arg0, %c0_i32, %c0_i32_0 : i32, i32, i32
  }
  func.func @transform_1(%arg0: i32) -> (i32, i32, i32) {
    %c0_i32 = arith.constant 0 : i32
    %c0_i32_0 = arith.constant 0 : i32
    %c0_i32_1 = arith.constant 0 : i32
    %c0_i32_2 = arith.constant 0 : i32
    return %c0_i32, %c0_i32_0, %c0_i32_1 : i32, i32, i32
  }
  func.func @transform_2(%arg0: i32) -> (i32, i32, i32) {
    %c0_i32 = arith.constant 0 : i32
    %c0_i32_0 = arith.constant 0 : i32
    %c0_i32_1 = arith.constant 0 : i32
    return %arg0, %c0_i32, %c0_i32_0 : i32, i32, i32
  }
  func.func @transform_3(%arg0: i32) -> (i32, i32, i32) {
    %c0_i32 = arith.constant 0 : i32
    %c0_i32_0 = arith.constant 0 : i32
    %c0_i32_1 = arith.constant 0 : i32
    return %arg0, %c0_i32, %c0_i32_0 : i32, i32, i32
  }
}

module attributes {stable_mosaic.version = 11 : i64} {
  func.func @conv2_kernel(%arg0: i32, %arg1: memref<2x16x128xbf16, #tpu.memory_space<vmem>>, %arg2: memref<1x128xf32, #tpu.memory_space<vmem>>, %arg3: memref<1x128xf32, #tpu.memory_space<vmem>>, %arg4: memref<3x128x128xbf16, #tpu.memory_space<vmem>>, %arg5: memref<2x16x128xbf16, #tpu.memory_space<vmem>>, %arg6: memref<1x2x128xf32, #tpu.memory_space<vmem>>, %arg7: memref<2x18x128xf32, #tpu.memory_space<vmem>>) attributes {dimension_semantics = [#tpu.dimension_semantics<parallel>], iteration_bounds = array<i64: 1>, scalar_prefetch = 0 : i64, scratch_operands = 1 : i64, tpu.core_type = #tpu.core_type<tc>, window_params = [{transform_indices = @transform_0, window_bounds = array<i64: 2, 16, 128>}, {pipeline_mode = #tpu.pipeline_mode<synchronous>, transform_indices = @transform_1, window_bounds = array<i64: 1, 128>}, {pipeline_mode = #tpu.pipeline_mode<synchronous>, transform_indices = @transform_2, window_bounds = array<i64: 1, 128>}, {pipeline_mode = #tpu.pipeline_mode<synchronous>, transform_indices = @transform_3, window_bounds = array<i64: 3, 128, 128>}, {transform_indices = @transform_4, window_bounds = array<i64: 2, 16, 128>}, {transform_indices = @transform_5, window_bounds = array<i64: 1, 2, 128>}]} {
    %c0 = arith.constant 0 : index
    %c0_0 = arith.constant 0 : index
    %c0_1 = arith.constant 0 : index
    %0 = vector.load %arg1[%c0, %c0_0, %c0_1] : memref<2x16x128xbf16, #tpu.memory_space<vmem>>, vector<2x16x128xbf16>
    %1 = arith.extf %0 : vector<2x16x128xbf16> to vector<2x16x128xf32>
    %c0_2 = arith.constant 0 : index
    %c0_3 = arith.constant 0 : index
    %2 = vector.load %arg2[%c0_2, %c0_3] : memref<1x128xf32, #tpu.memory_space<vmem>>, vector<1x128xf32>
    %3 = vector.shape_cast %2 : vector<1x128xf32> to vector<1x1x128xf32>
    %4 = vector.broadcast %3 : vector<1x1x128xf32> to vector<2x16x128xf32>
    %5 = arith.mulf %1, %4 : vector<2x16x128xf32>
    %c0_4 = arith.constant 0 : index
    %c0_5 = arith.constant 0 : index
    %6 = vector.load %arg3[%c0_4, %c0_5] : memref<1x128xf32, #tpu.memory_space<vmem>>, vector<1x128xf32>
    %7 = vector.shape_cast %6 : vector<1x128xf32> to vector<1x1x128xf32>
    %8 = vector.broadcast %7 : vector<1x1x128xf32> to vector<2x16x128xf32>
    %9 = arith.addf %5, %8 : vector<2x16x128xf32>
    %cst = arith.constant 0.000000e+00 : f32
    %10 = vector.broadcast %cst : f32 to vector<2x16x128xf32>
    %11 = arith.maximumf %9, %10 : vector<2x16x128xf32>
    %cst_6 = arith.constant 0.000000e+00 : f32
    %12 = vector.broadcast %cst_6 : f32 to vector<2x1x128xf32>
    %c0_7 = arith.constant 0 : index
    %c0_8 = arith.constant 0 : index
    %c0_9 = arith.constant 0 : index
    %13 = vector.load %arg7[%c0_7, %c0_8, %c0_9] : memref<2x18x128xf32, #tpu.memory_space<vmem>>, vector<2x1x128xf32>
    tpu.vector_store %arg7[%c0_7, %c0_8, %c0_9], %12 {strides = array<i32>} : memref<2x18x128xf32, #tpu.memory_space<vmem>>, vector<2x1x128xf32>,
    %cst_10 = arith.constant 0.000000e+00 : f32
    %14 = vector.broadcast %cst_10 : f32 to vector<2x1x128xf32>
    %c0_11 = arith.constant 0 : index
    %c17 = arith.constant 17 : index
    %c0_12 = arith.constant 0 : index
    %15 = vector.load %arg7[%c0_11, %c17, %c0_12] : memref<2x18x128xf32, #tpu.memory_space<vmem>>, vector<2x1x128xf32>
    tpu.vector_store %arg7[%c0_11, %c17, %c0_12], %14 {strides = array<i32>} : memref<2x18x128xf32, #tpu.memory_space<vmem>>, vector<2x1x128xf32>,
    %c0_13 = arith.constant 0 : index
    %c1 = arith.constant 1 : index
    %c0_14 = arith.constant 0 : index
    %16 = vector.load %arg7[%c0_13, %c1, %c0_14] : memref<2x18x128xf32, #tpu.memory_space<vmem>>, vector<2x16x128xf32>
    tpu.vector_store %arg7[%c0_13, %c1, %c0_14], %11 {strides = array<i32>} : memref<2x18x128xf32, #tpu.memory_space<vmem>>, vector<2x16x128xf32>,
    %c0_15 = arith.constant 0 : index
    %c0_16 = arith.constant 0 : index
    %c0_17 = arith.constant 0 : index
    %17 = vector.load %arg7[%c0_15, %c0_16, %c0_17] : memref<2x18x128xf32, #tpu.memory_space<vmem>>, vector<2x16x128xf32>
    %18 = arith.truncf %17 : vector<2x16x128xf32> to vector<2x16x128xbf16>
    %19 = vector.shape_cast %18 : vector<2x16x128xbf16> to vector<32x128xbf16>
    %c0_18 = arith.constant 0 : index
    %c0_19 = arith.constant 0 : index
    %c0_20 = arith.constant 0 : index
    %20 = vector.load %arg4[%c0_18, %c0_19, %c0_20] : memref<3x128x128xbf16, #tpu.memory_space<vmem>>, vector<1x128x128xbf16>
    %21 = vector.shape_cast %20 : vector<1x128x128xbf16> to vector<128x128xbf16>
    %cst_21 = arith.constant dense<0.000000e+00> : vector<32x128xf32>
    %22 = tpu.matmul %19, %21, %cst_21 {dimension_numbers = #tpu.dot_dimension_numbers<[1], [0], [0], [1], [0, 0, 1, 1], [], []>} : vector<32x128xbf16>, vector<128x128xbf16>, vector<32x128xf32> -> vector<32x128xf32>
    %c0_22 = arith.constant 0 : index
    %c1_23 = arith.constant 1 : index
    %c0_24 = arith.constant 0 : index
    %23 = vector.load %arg7[%c0_22, %c1_23, %c0_24] : memref<2x18x128xf32, #tpu.memory_space<vmem>>, vector<2x16x128xf32>
    %24 = arith.truncf %23 : vector<2x16x128xf32> to vector<2x16x128xbf16>
    %25 = vector.shape_cast %24 : vector<2x16x128xbf16> to vector<32x128xbf16>
    %c1_25 = arith.constant 1 : index
    %c0_26 = arith.constant 0 : index
    %c0_27 = arith.constant 0 : index
    %26 = vector.load %arg4[%c1_25, %c0_26, %c0_27] : memref<3x128x128xbf16, #tpu.memory_space<vmem>>, vector<1x128x128xbf16>
    %27 = vector.shape_cast %26 : vector<1x128x128xbf16> to vector<128x128xbf16>
    %cst_28 = arith.constant dense<0.000000e+00> : vector<32x128xf32>
    %28 = tpu.matmul %25, %27, %cst_28 {dimension_numbers = #tpu.dot_dimension_numbers<[1], [0], [0], [1], [0, 0, 1, 1], [], []>} : vector<32x128xbf16>, vector<128x128xbf16>, vector<32x128xf32> -> vector<32x128xf32>
    %29 = arith.addf %22, %28 : vector<32x128xf32>
    %c0_29 = arith.constant 0 : index
    %c2 = arith.constant 2 : index
    %c0_30 = arith.constant 0 : index
    %30 = vector.load %arg7[%c0_29, %c2, %c0_30] : memref<2x18x128xf32, #tpu.memory_space<vmem>>, vector<2x16x128xf32>
    %31 = arith.truncf %30 : vector<2x16x128xf32> to vector<2x16x128xbf16>
    %32 = vector.shape_cast %31 : vector<2x16x128xbf16> to vector<32x128xbf16>
    %c2_31 = arith.constant 2 : index
    %c0_32 = arith.constant 0 : index
    %c0_33 = arith.constant 0 : index
    %33 = vector.load %arg4[%c2_31, %c0_32, %c0_33] : memref<3x128x128xbf16, #tpu.memory_space<vmem>>, vector<1x128x128xbf16>
    %34 = vector.shape_cast %33 : vector<1x128x128xbf16> to vector<128x128xbf16>
    %cst_34 = arith.constant dense<0.000000e+00> : vector<32x128xf32>
    %35 = tpu.matmul %32, %34, %cst_34 {dimension_numbers = #tpu.dot_dimension_numbers<[1], [0], [0], [1], [0, 0, 1, 1], [], []>} : vector<32x128xbf16>, vector<128x128xbf16>, vector<32x128xf32> -> vector<32x128xf32>
    %36 = arith.addf %29, %35 : vector<32x128xf32>
    %37 = vector.shape_cast %36 : vector<32x128xf32> to vector<2x16x128xf32>
    %38 = arith.truncf %37 : vector<2x16x128xf32> to vector<2x16x128xbf16>
    %c0_35 = arith.constant 0 : index
    %c0_36 = arith.constant 0 : index
    %c0_37 = arith.constant 0 : index
    %39 = vector.load %arg5[%c0_35, %c0_36, %c0_37] : memref<2x16x128xbf16, #tpu.memory_space<vmem>>, vector<2x16x128xbf16>
    tpu.vector_store %arg5[%c0_35, %c0_36, %c0_37], %38 {strides = array<i32>} : memref<2x16x128xbf16, #tpu.memory_space<vmem>>, vector<2x16x128xbf16>,
    %cst_38 = arith.constant dense<0.000000e+00> : vector<128xf32>
    %40 = vector.multi_reduction <add>, %36, %cst_38 [0] : vector<32x128xf32> to vector<128xf32>
    %41 = vector.shape_cast %40 : vector<128xf32> to vector<1x128xf32>
    %cst_39 = arith.constant 3.125000e-02 : f32
    %42 = vector.broadcast %cst_39 : f32 to vector<1x128xf32>
    %43 = arith.mulf %41, %42 : vector<1x128xf32>
    %44 = vector.broadcast %43 : vector<1x128xf32> to vector<32x128xf32>
    %45 = arith.subf %36, %44 : vector<32x128xf32>
    %46 = arith.mulf %45, %45 : vector<32x128xf32>
    %cst_40 = arith.constant dense<0.000000e+00> : vector<128xf32>
    %47 = vector.multi_reduction <add>, %46, %cst_40 [0] : vector<32x128xf32> to vector<128xf32>
    %48 = vector.shape_cast %47 : vector<128xf32> to vector<1x128xf32>
    %c0_41 = arith.constant 0 : index
    %c0_42 = arith.constant 0 : index
    %c0_43 = arith.constant 0 : index
    %49 = vector.load %arg6[%c0_41, %c0_42, %c0_43] : memref<1x2x128xf32, #tpu.memory_space<vmem>>, vector<1x1x128xf32>
    %50 = vector.shape_cast %49 : vector<1x1x128xf32> to vector<1x128xf32>
    %51 = vector.shape_cast %43 : vector<1x128xf32> to vector<1x1x128xf32>
    tpu.vector_store %arg6[%c0_41, %c0_42, %c0_43], %51 {strides = array<i32>} : memref<1x2x128xf32, #tpu.memory_space<vmem>>, vector<1x1x128xf32>,
    %c0_44 = arith.constant 0 : index
    %c1_45 = arith.constant 1 : index
    %c0_46 = arith.constant 0 : index
    %52 = vector.load %arg6[%c0_44, %c1_45, %c0_46] : memref<1x2x128xf32, #tpu.memory_space<vmem>>, vector<1x1x128xf32>
    %53 = vector.shape_cast %52 : vector<1x1x128xf32> to vector<1x128xf32>
    %54 = vector.shape_cast %48 : vector<1x128xf32> to vector<1x1x128xf32>
    tpu.vector_store %arg6[%c0_44, %c1_45, %c0_46], %54 {strides = array<i32>} : memref<1x2x128xf32, #tpu.memory_space<vmem>>, vector<1x1x128xf32>,
    return
  }
  func.func @transform_0(%arg0: i32) -> (i32, i32, i32) {
    %c0_i32 = arith.constant 0 : i32
    %c0_i32_0 = arith.constant 0 : i32
    %c0_i32_1 = arith.constant 0 : i32
    return %arg0, %c0_i32, %c0_i32_0 : i32, i32, i32
  }
  func.func @transform_1(%arg0: i32) -> (i32, i32) {
    %c0_i32 = arith.constant 0 : i32
    %c0_i32_0 = arith.constant 0 : i32
    %c0_i32_1 = arith.constant 0 : i32
    return %c0_i32, %c0_i32_0 : i32, i32
  }
  func.func @transform_2(%arg0: i32) -> (i32, i32) {
    %c0_i32 = arith.constant 0 : i32
    %c0_i32_0 = arith.constant 0 : i32
    %c0_i32_1 = arith.constant 0 : i32
    return %c0_i32, %c0_i32_0 : i32, i32
  }
  func.func @transform_3(%arg0: i32) -> (i32, i32, i32) {
    %c0_i32 = arith.constant 0 : i32
    %c0_i32_0 = arith.constant 0 : i32
    %c0_i32_1 = arith.constant 0 : i32
    %c0_i32_2 = arith.constant 0 : i32
    return %c0_i32, %c0_i32_0, %c0_i32_1 : i32, i32, i32
  }
  func.func @transform_4(%arg0: i32) -> (i32, i32, i32) {
    %c0_i32 = arith.constant 0 : i32
    %c0_i32_0 = arith.constant 0 : i32
    %c0_i32_1 = arith.constant 0 : i32
    return %arg0, %c0_i32, %c0_i32_0 : i32, i32, i32
  }
  func.func @transform_5(%arg0: i32) -> (i32, i32, i32) {
    %c0_i32 = arith.constant 0 : i32
    %c0_i32_0 = arith.constant 0 : i32
    %c0_i32_1 = arith.constant 0 : i32
    return %arg0, %c0_i32, %c0_i32_0 : i32, i32, i32
  }
}

</mosaic_0001>

<bundles_post_ra>
// kernel: squeeze.16
= control target key start
LH: loop header
LB: loop body
LE: loop exit
PB: predicated region body
PF: predicated region fallthrough
CT: control target
= control target key end

     0   :  { %s130_s8 = smov 104   ;;  %s131_s9 = smov 112   ;;  %vm7_vm0 = vcmask 64512   ;;  %s221_s0 = inlined_call_operand.vmem [shape: f32[128], index: 0, kind: input, shape index: {}]   ;;  %s222_s1 = inlined_call_operand.vmem [shape: f32[16,8], index: 1, kind: output, shape index: {}]  }
   0x1   :  { %v4_v0 = vld [vmem:[%s221_s0] sm:$0x1]  ;;  %s129_s0 = smov 120   ;;  %s132_s10 = smov 96  }
   0x2   :  { %5 = vst [vmem:[#allocation0] sm:$0x1] %v4_v0  ;;  %s133_s11 = smov 88   ;;  %s134_s12 = smov 80  }
   0x3   :  { %s135_s13 = smov 72   ;;  %s136_s14 = smov 64  }
   0x4   :  { %s137_s17 = smov 56   ;;  %s138_s18 = smov 48  }
   0x5   :  { %s139_s19 = smov 40   ;;  %s140_s20 = smov 32  }
   0x6   :  { %s141_s21 = smov 24   ;;  %s142_s22 = smov 16  }
   0x7   :  { %s143_s23 = smov 8  }
   0x9   :  { %v9_v1 = vld [vmem:[#allocation0] sm:$0x1]  }
   0xa   :  { %v21_v2 = vld [vmem:[#allocation0] sm:$0x1]   ;;  %10 = vrot.lane.b32.xlu0 %v9_v1, %s129_s0 }
   0xb   :  { %22 = vrot.lane.b32.xlu1 %v21_v2, %s130_s8  ;;  %v15_v3 = vld [vmem:[#allocation0] sm:$0x1]  }
   0xc   :  { %v27_v4 = vld [vmem:[#allocation0] sm:$0x1]  }
   0xd   :  { %v33_v5 = vld [vmem:[#allocation0] sm:$0x1]  }
   0xe   :  { %16 = vrot.lane.b32.xlu0 %v15_v3, %s131_s9  ;;  %v39_v6 = vld [vmem:[#allocation0] sm:$0x1]  }
   0xf   :  { %28 = vrot.lane.b32.xlu1 %v27_v4, %s132_s10  ;;  %v45_v7 = vld [vmem:[#allocation0] sm:$0x1]  }
  0x10   :  { %v51_v8 = vld [vmem:[#allocation0] sm:$0x1]  }
  0x11   :  { %v57_v9 = vld [vmem:[#allocation0] sm:$0x1]  }
  0x12   :  { %34 = vrot.lane.b32.xlu0 %v33_v5, %s133_s11  ;;  %v63_v10 = vld [vmem:[#allocation0] sm:$0x1]  }
  0x13   :  { %40 = vrot.lane.b32.xlu1 %v39_v6, %s134_s12  ;;  %v6_v11 = vld [vmem:[#allocation0] sm:$0x1]  }
  0x14   :  { %8 = vst.msk [vmem:[%s222_s1] sm:$0x1] %vm7_vm0, %v6_v11   ;;  %v69_v12 = vld [vmem:[#allocation0] sm:$0x1]  }
  0x15   :  { %v75_v13 = vld [vmem:[#allocation0] sm:$0x1]  }
  0x16   :  { %46 = vrot.lane.b32.xlu0 %v45_v7, %s135_s13  ;;  %v81_v14 = vld [vmem:[#allocation0] sm:$0x1]  }
  0x17   :  { %52 = vrot.lane.b32.xlu1 %v51_v8, %s136_s14  ;;  %v87_v15 = vld [vmem:[#allocation0] sm:$0x1]  }
  0x18   :  { %v93_v16 = vld [vmem:[#allocation0] sm:$0x1]  }
  0x1a   :  { %58 = vrot.lane.b32.xlu0 %v57_v9, %s137_s17 }
  0x1b   :  { %64 = vrot.lane.b32.xlu1 %v63_v10, %s138_s18 }
  0x1e   :  { %70 = vrot.lane.b32.xlu0 %v69_v12, %s139_s19 }
  0x1f   :  { %76 = vrot.lane.b32.xlu1 %v75_v13, %s140_s20 }
  0x22   :  { %82 = vrot.lane.b32.xlu0 %v81_v14, %s141_s21 }
  0x23   :  { %88 = vrot.lane.b32.xlu1 %v87_v15, %s142_s22 }
  0x26   :  { %94 = vrot.lane.b32.xlu0 %v93_v16, %s143_s23 }
  0x7c   :  { %v11_v17 = vpop.permute.xlu0 %10  }
  0x7d   :  { %v23_v18 = vpop.permute.xlu1 %22   ;;  %99 = vst.msk [vmem:[%s222_s1 + $0x1] sm:$0x1] %vm7_vm0, %v11_v17  }
  0x7e   :  { %101 = vst.msk [vmem:[%s222_s1 + $0x3] sm:$0x1] %vm7_vm0, %v23_v18  }
  0x80   :  { %v17_v19 = vpop.permute.xlu0 %16  }
  0x81   :  { %v29_v20 = vpop.permute.xlu1 %28   ;;  %100 = vst.msk [vmem:[%s222_s1 + $0x2] sm:$0x1] %vm7_vm0, %v17_v19  }
  0x82   :  { %102 = vst.msk [vmem:[%s222_s1 + $0x4] sm:$0x1] %vm7_vm0, %v29_v20  }
  0x84   :  { %v35_v21 = vpop.permute.xlu0 %34  }
  0x85   :  { %v41_v22 = vpop.permute.xlu1 %40   ;;  %103 = vst.msk [vmem:[%s222_s1 + $0x5] sm:$0x1] %vm7_vm0, %v35_v21  }
  0x86   :  { %104 = vst.msk [vmem:[%s222_s1 + $0x6] sm:$0x1] %vm7_vm0, %v41_v22  }
  0x88   :  { %v47_v23 = vpop.permute.xlu0 %46  }
  0x89   :  { %v53_v24 = vpop.permute.xlu1 %52   ;;  %105 = vst.msk [vmem:[%s222_s1 + $0x7] sm:$0x1] %vm7_vm0, %v47_v23  }
  0x8a   :  { %106 = vst.msk [vmem:[%s222_s1 + $0x8] sm:$0x1] %vm7_vm0, %v53_v24  }
  0x8c   :  { %v59_v25 = vpop.permute.xlu0 %58  }
  0x8d   :  { %v65_v26 = vpop.permute.xlu1 %64   ;;  %107 = vst.msk [vmem:[%s222_s1 + $0x9] sm:$0x1] %vm7_vm0, %v59_v25  }
  0x8e   :  { %108 = vst.msk [vmem:[%s222_s1 + $0xa] sm:$0x1] %vm7_vm0, %v65_v26  }
  0x90   :  { %v71_v27 = vpop.permute.xlu0 %70  }
  0x91   :  { %v77_v28 = vpop.permute.xlu1 %76   ;;  %109 = vst.msk [vmem:[%s222_s1 + $0xb] sm:$0x1] %vm7_vm0, %v71_v27  }
  0x92   :  { %110 = vst.msk [vmem:[%s222_s1 + $0xc] sm:$0x1] %vm7_vm0, %v77_v28  }
  0x94   :  { %v83_v29 = vpop.permute.xlu0 %82  }
  0x95   :  { %v89_v30 = vpop.permute.xlu1 %88   ;;  %111 = vst.msk [vmem:[%s222_s1 + $0xd] sm:$0x1] %vm7_vm0, %v83_v29  }
  0x96   :  { %112 = vst.msk [vmem:[%s222_s1 + $0xe] sm:$0x1] %vm7_vm0, %v89_v30  }
  0x98   :  { %v95_v31 = vpop.permute.xlu0 %94  }
  0x99   :  { %113 = vst.msk [vmem:[%s222_s1 + $0xf] sm:$0x1] %vm7_vm0, %v95_v31  }

// kernel: double_convolution.2
= control target key start
LH: loop header
LB: loop body
LE: loop exit
PB: predicated region body
PF: predicated region fallthrough
CT: control target
= control target key end

     0   :  { %vm118_vm0 = vcmask 523264   ;;  %vm28_vm1 = vsmask.f32 3328  ;;  %vm29_vm2 = vsmask.f32 7440  ;;  %vm269_vm3 = vcmask 1042432   ;;  %s716_s1 = inlined_call_operand.vmem [shape: bf16[3,64,128], index: 1, kind: input, shape index: {}]   ;;  %s717_s0 = inlined_call_operand.vmem [shape: bf16[2,18,64], index: 0, kind: input, shape index: {}]   ;;  %s718_s2 = inlined_call_operand.vmem [shape: bf16[2,16,128], index: 2, kind: output, shape index: {0}]   ;;  %s719_s3 = inlined_call_operand.vmem [shape: f32[1,2,128], index: 3, kind: output, shape index: {1}]  }
   0x1   :  { %v564_v0 = vld [vmem:[%s716_s1] sm:$0xff]   ;;  %v565_v1 = vld [vmem:[%s716_s1 + $0x8] sm:$0xff]   ;;  %v566_v2 = vld [vmem:[%s716_s1 + $0x10] sm:$0xff]   ;;  %vm270_vm4 = vcmask 1046532  }
   0x2   :  { %532 = vmatprep.subr.bf16.mxu0 %v564_v0  ;;  %v568_v3 = vld [vmem:[%s716_s1 + $0x20] sm:$0xff]   ;;  %v571_v9 = vld [vmem:[%s716_s1 + $0x28] sm:$0xff]   ;;  %v567_v10 = vld [vmem:[%s716_s1 + $0x18] sm:$0xff]  }
   0x3   :  { %533 = vmatpush3.bf16.msra.mxu0 %v564_v0  ;;  %v14_v4 = vld [vmem:[%s717_s0] sm:$0xf]  ;;  %v616_v5 = vld [vmem:[%s717_s0 + $0x4] sm:$0xf]  ;;  %520 = vmatprep.subr.bf16.mxu1 %v568_v3  ;;  %v16_v13 = vld [vmem:[%s717_s0 + $0xc] sm:$0xf] }
   0x4   :  { %534 = vmatprep.subr.bf16.mxu0 %v565_v1  ;;  %v32_v6 = vshrl.u32 %v14_v4, 16  ;;  %v35_v7 = vshll.u32 %v14_v4, 16  ;;  %v457_v8 = vcombine.low %v14_v4, %v616_v5  ;;  %521 = vmatpush3.bf16.msra.mxu1 %v568_v3  ;;  %v45_v14 = vshrl.u32 %v616_v5, 16  ;;  %v570_v18 = vld [vmem:[%s716_s1 + $0x40] sm:$0xff]   ;;  %v637_v19 = vld [vmem:[%s717_s0 + $0x10] sm:$0xf]  ;;  %vm653_vm5 = vmor %vm269_vm3, %vm270_vm4 }
   0x5   :  { %v274_v15 = vrot.slane %v616_v5, 5  ;;  %522 = vmatprep.subr.bf16.mxu1 %v571_v9  ;;  %v56_v16 = vshrl.u32 %v16_v13, 16  ;;  %v59_v17 = vshll.u32 %v16_v13, 16  ;;  %v69_v22 = vshrl.u32 %v637_v19, 16  ;;  %v574_v23 = vld [vmem:[%s716_s1 + $0x30] sm:$0xff]   ;;  %v576_v27 = vld [vmem:[%s716_s1 + $0x38] sm:$0xff]   ;;  %vm665_vm6 = vmor %vm28_vm1, %vm29_vm2 }
   0x6   :  { %v34_v11 = vrot.slane %v32_v6, 4  ;;  %v37_v12 = vrot.slane %v35_v7, 5  ;;  %540 = vmatprep.mubr.msk.bf16.mxu0 %vm118_vm0, %v457_v8  ;;  %v458_v26 = vcombine.low %v16_v13, %v637_v19  ;;  %v26_v28 = vld [vmem:[%s717_s0 + $0x8] sm:$0x1]  ;;  %v41_v30 = vshll.u32 %v616_v5, 16  ;;  %v575_v53 = vld [vmem:[%s716_s1 + $0x50] sm:$0xff]  }
   0x7   :  { %535 = vmatpush3.bf16.msra.mxu0 %v565_v1  ;;  %v58_v20 = vrot.slane %v56_v16, 4  ;;  %v61_v21 = vrot.slane %v59_v17, 5  ;;  %v276_v25 = vrot.slane %v274_v15, 4  ;;  %v47_v31 = vrot.slane %v45_v14, 4  ;;  %v27_v36 = vld [vmem:[%s717_s0 + $0x14] sm:$0x1] }
   0x8   :  { %536 = vmatprep.subr.bf16.mxu0 %v566_v2  ;;  %523 = vmatpush3.bf16.msra.mxu1 %v571_v9  ;;  %v38_v24 = vor.u32 %v37_v12, %v34_v11  ;;  %v51_v32 = vshll.u32 %v26_v28, 16  ;;  %v277_v33 = vrot.slane %v26_v28, 5  ;;  %v573_v37 = vld [vmem:[%s716_s1 + $0x48] sm:$0xff]   ;;  %v43_v39 = vrot.slane %v41_v30, 5  ;;  %v263_v42 = vld [vmem:[%s717_s0] sm:$0xe] }
   0x9   :  { %524 = vmatprep.subr.bf16.mxu1 %v574_v23  ;;  %v62_v29 = vor.u32 %v61_v21, %v58_v20  ;;  %v65_v40 = vshll.u32 %v637_v19, 16  ;;  %v71_v41 = vrot.slane %v69_v22, 4  ;;  %v75_v43 = vshll.u32 %v27_v36, 16  ;;  %v264_v58 = vld [vmem:[%s717_s0 + $0xc] sm:$0xe] }
   0xa   :  { %v39_v35 = vrot.slane %v38_v24, 4  ;;  %v465_v44 = vrot.slane %v263_v42, 9  ;;  %v278_v45 = vsel %vm653_vm5, %v276_v25, %v277_v33  ;;  %v48_v46 = vor.u32 %v47_v31, %v43_v39 }
   0xb   :  { %537 = vmatpush3.bf16.msra.mxu0 %v566_v2  ;;  %v53_v47 = vrot.slane %v51_v32, 5  ;;  %v63_v48 = vrot.slane %v62_v29, 4  ;;  %v67_v49 = vrot.slane %v65_v40, 5  ;;  %v281_v50 = vrot.slane %v637_v19, 5  ;;  %v577_v2 = vld [vmem:[%s716_s1 + $0x58] sm:$0xff]  }
   0xc   :  { %538 = vmatprep.subr.bf16.mxu0 %v567_v10  ;;  %525 = vmatpush3.bf16.msra.mxu1 %v574_v23  ;;  %v44_v51 = vsel %vm665_vm6, %v39_v35, %v43_v39  ;;  %v275_v52 = vsel %vm653_vm5, %v465_v44, %v274_v15  ;;  %v49_v54 = vrot.slane %v48_v46, 4  ;;  %v77_v56 = vrot.slane %v75_v43, 5 }
   0xd   :  { %526 = vmatprep.subr.bf16.mxu1 %v576_v27  ;;  %v72_v55 = vor.u32 %v71_v41, %v67_v49  ;;  %v475_v57 = vcombine.low %v275_v52, %v278_v45  ;;  %v68_v60 = vsel %vm665_vm6, %v63_v48, %v67_v49  ;;  %v284_v63 = vrot.slane %v27_v36, 5 }
   0xe   :  { %v54_v59 = vsel %vm665_vm6, %v49_v54, %v53_v47  ;;  %v466_v0 = vrot.slane %v264_v58, 9  ;;  %v283_v1 = vrot.slane %v281_v50, 4 }
   0xf   :  { %539 = vmatpush3.bf16.msra.mxu0 %v567_v10  ;;  %v73_v61 = vrot.slane %v72_v55, 4  ;;  %v449_v62 = vcombine.low %v44_v51, %v54_v59 }
  0x10   :  { %544 = vmatprep.subr.bf16.mxu0 %v570_v18  ;;  %527 = vmatpush3.bf16.msra.mxu1 %v576_v27  ;;  %v282_v5 = vsel %vm653_vm5, %v466_v0, %v281_v50  ;;  %v285_v6 = vsel %vm653_vm5, %v283_v1, %v284_v63 }
  0x11   :  { %v78_v3 = vsel %vm665_vm6, %v73_v61, %v77_v56  ;;  %528 = vmatprep.mubr.msk.bf16.mxu1 %vm118_vm0, %v449_v62  ;;  %v476_v7 = vcombine.low %v282_v5, %v285_v6 }
  0x12   :  { %541 = vmatmul.mubr.msk.bf16.vlgmr.msra.gmra.mrb[0].mxu0 %vm118_vm0, %v458_v26  ;;  %v450_v4 = vcombine.low %v68_v60, %v78_v3 }
  0x13   :  { %545 = vmatpush3.bf16.msra.mxu0 %v570_v18  ;;  %552 = vmatprep.mubr.msk.bf16.mxu0 %vm118_vm0, %v475_v57 }
  0x14   :  { %546 = vmatprep.subr.bf16.mxu0 %v573_v37  ;;  %529 = vmatmul.mubr.msk.bf16.vlgmr.msra.gmra.mrb[0].mxu1 %vm118_vm0, %v450_v4 }
  0x17   :  { %547 = vmatpush3.bf16.msra.mxu0 %v573_v37 }
  0x18   :  { %548 = vmatprep.subr.bf16.mxu0 %v575_v53 }
  0x1b   :  { %549 = vmatpush3.bf16.msra.mxu0 %v575_v53 }
  0x1c   :  { %550 = vmatprep.subr.bf16.mxu0 %v577_v2 }
  0x1f   :  { %551 = vmatpush3.bf16.msra.mxu0 %v577_v2 }
  0x22   :  { %553 = vmatmul.mubr.msk.bf16.vlgmr.msra.gmra.mrb[0].mxu0 %vm118_vm0, %v476_v7 }
  0xe7   :  { %v530_v8 = vpop.f32.mrb[0].mxu1 }
  0xe8   :  { %v159_v9 = vpop.f32.mrb[1].mxu1 }
  0xe9   :  { %v531_v10 = vpop.f32.mrb[2].mxu1 }
  0xea   :  { %v162_v11 = vpop.f32.mrb[3].mxu1 }
  0xf5   :  { %v554_v12 = vpop.f32.mrb[0].mxu0 }
  0xf6   :  { %v556_v13 = vadd.f32 %v554_v12, %v530_v8  ;;  %v365_v14 = vpop.f32.mrb[1].mxu0 }
  0xf7   :  { %v557_v15 = vadd.f32 %v365_v14, %v159_v9  ;;  %v555_v16 = vpop.f32.mrb[2].mxu0 }
  0xf8   :  { %v558_v17 = vadd.f32 %v555_v16, %v531_v10  ;;  %v368_v18 = vpop.f32.mrb[3].mxu0 }
  0xf9   :  { %v559_v19 = vadd.f32 %v368_v18, %v162_v11 }
  0xfa   :  { %v499_v20 = vpack.c.bf16 %v558_v17, %v556_v13 }
  0xfb   :  { %v494_v21 = vpack.c.bf16 %v559_v19, %v557_v15  ;;  %v404_v22 = vadd.f32 %v559_v19, %v557_v15 }
  0xfc   :  { %501 = vst [vmem:[%s718_s2 + $0x8] sm:$0xff] %v499_v20  }
  0xfd   :  { %495 = vst [vmem:[%s718_s2] sm:$0xff] %v494_v21   ;;  %v405_v23 = vadd.f32 %v556_v13, %v404_v22 }
  0xff   :  { %v406_v24 = vadd.f32 %v558_v17, %v405_v23 }
 0x101   :  { %v407_v25 = vrot.slane %v406_v24, 4 }
 0x103   :  { %v408_v26 = vadd.f32 %v407_v25, %v406_v24 }
 0x105   :  { %v409_v27 = vrot.slane %v408_v26, 2 }
 0x107   :  { %v410_v28 = vadd.f32 %v409_v27, %v408_v26 }
 0x109   :  { %v411_v29 = vrot.slane %v410_v28, 1 }
 0x10b   :  { %v412_v30 = vadd.f32 %v411_v29, %v410_v28 }
 0x10d   :  { %v413_v31 = vmul.f32 0.03125, %v412_v30 }
 0x10f   :  { %v414_v32 = vsub.f32 %v557_v15, %v413_v31  ;;  %v415_v33 = vsub.f32 %v559_v19, %v413_v31  ;;  %v416_v34 = vsub.f32 %v556_v13, %v413_v31  ;;  %v417_v35 = vsub.f32 %v558_v17, %v413_v31  ;;  %431 = vst [vmem:[%s719_s3] sm:$0x1] %v413_v31 }
 0x111   :  { %v418_v36 = vmul.f32 %v414_v32, %v414_v32  ;;  %v419_v37 = vmul.f32 %v415_v33, %v415_v33  ;;  %v420_v38 = vmul.f32 %v416_v34, %v416_v34  ;;  %v421_v40 = vmul.f32 %v417_v35, %v417_v35 }
 0x113   :  { %v422_v39 = vadd.f32 %v419_v37, %v418_v36 }
 0x115   :  { %v423_v41 = vadd.f32 %v422_v39, %v420_v38 }
 0x117   :  { %v424_v42 = vadd.f32 %v423_v41, %v421_v40 }
 0x119   :  { %v425_v43 = vrot.slane %v424_v42, 4 }
 0x11b   :  { %v426_v44 = vadd.f32 %v425_v43, %v424_v42 }
 0x11d   :  { %v427_v45 = vrot.slane %v426_v44, 2 }
 0x11f   :  { %v428_v46 = vadd.f32 %v427_v45, %v426_v44 }
 0x121   :  { %v429_v47 = vrot.slane %v428_v46, 1 }
 0x123   :  { %v430_v48 = vadd.f32 %v429_v47, %v428_v46 }
 0x125   :  { %432 = vst [vmem:[%s719_s3 + $0x1] sm:$0x1] %v430_v48 }

// kernel: tile.18
= control target key start
LH: loop header
LB: loop body
LE: loop exit
PB: predicated region body
PF: predicated region fallthrough
CT: control target
= control target key end

     0   :  { %s28_s0 = inlined_call_operand.vmem [shape: f32[8], index: 0, kind: input, shape index: {}]   ;;  %s29_s1 = inlined_call_operand.vmem [shape: f32[16,8], index: 1, kind: output, shape index: {}]  }
   0x1   :  { %v4_v0 = vld [vmem:[%s28_s0] ss:$0 sm:$0xff] }
   0x2   :  { %5 = vst [vmem:[%s29_s1] sm:$0xff] %v4_v0  ;;  %8 = vst [vmem:[%s29_s1 + $0x8] sm:$0xff] %v4_v0 }

// kernel: tile.19
= control target key start
LH: loop header
LB: loop body
LE: loop exit
PB: predicated region body
PF: predicated region fallthrough
CT: control target
= control target key end

     0   :  { %s131_s10 = smov 120   ;;  %s132_s11 = smov 104   ;;  %vm3_vm0 = vcmask 64512   ;;  %vm9_vm1 = vcmask 1048512   ;;  %vm15_vm2 = vcmask 982912   ;;  %vm21_vm3 = vcmask 917312   ;;  %s207_s0 = inlined_call_operand.vmem [shape: f32[16,8], index: 0, kind: input, shape index: {}]   ;;  %s208_s1 = inlined_call_operand.vmem [shape: f32[1,128], index: 1, kind: output, shape index: {}]  }
   0x1   :  { %v101_v0 = vld [vmem:[%s207_s0 + $0xf] sm:$0x1]   ;;  %v103_v1 = vld [vmem:[%s207_s0 + $0xd] sm:$0x1]   ;;  %v102_v2 = vld [vmem:[%s207_s0 + $0xe] sm:$0x1]  }
   0x2   :  { %7 = vrot.lane.b32.xlu0 %v101_v0, %s131_s10  ;;  %19 = vrot.lane.b32.xlu1 %v103_v1, %s132_s11  ;;  %v104_v3 = vld [vmem:[%s207_s0 + $0xc] sm:$0x1]   ;;  %s133_s16 = smov 112   ;;  %s134_s17 = smov 96   ;;  %v105_v4 = vld [vmem:[%s207_s0 + $0xb] sm:$0x1]  }
   0x3   :  { %v106_v5 = vld [vmem:[%s207_s0 + $0xa] sm:$0x1]   ;;  %v2_v6 = vld [vmem:[%s207_s0] sm:$0x1]   ;;  %s135_s24 = smov 88   ;;  %s136_s25 = smov 80  }
   0x4   :  { %4 = vst.msk [vmem:[#allocation0] sm:$0x1] %vm3_vm0, %v2_v6   ;;  %v107_v7 = vld [vmem:[%s207_s0 + $0x9] sm:$0x1]   ;;  %v108_v8 = vld [vmem:[%s207_s0 + $0x8] sm:$0x1]  }
   0x5   :  { %s137_s30 = smov 72   ;;  %s138_s2 = smov 64   ;;  %v109_v9 = vld [vmem:[%s207_s0 + $0x7] sm:$0x1]   ;;  %v110_v10 = vld [vmem:[%s207_s0 + $0x6] sm:$0x1]  }
   0x6   :  { %13 = vrot.lane.b32.xlu0 %v102_v2, %s133_s16  ;;  %25 = vrot.lane.b32.xlu1 %v104_v3, %s134_s17  ;;  %s139_s7 = smov 56   ;;  %s140_s8 = smov 48   ;;  %v111_v11 = vld [vmem:[%s207_s0 + $0x5] sm:$0x1]   ;;  %v112_v12 = vld [vmem:[%s207_s0 + $0x4] sm:$0x1]  }
   0x7   :  { %s141_s13 = smov 40   ;;  %s142_s14 = smov 32   ;;  %v113_v13 = vld [vmem:[%s207_s0 + $0x3] sm:$0x1]   ;;  %v114_v14 = vld [vmem:[%s207_s0 + $0x2] sm:$0x1]  }
   0x8   :  { %s143_s19 = smov 24   ;;  %s144_s20 = smov 16   ;;  %v115_v15 = vld [vmem:[%s207_s0 + $0x1] sm:$0x1]   ;;  %vm27_vm4 = vcmask 851712   ;;  %vm33_vm5 = vcmask 786112  }
   0x9   :  { %s145_s0 = smov 8   ;;  %vm39_vm6 = vcmask 720512   ;;  %vm45_vm7 = vcmask 654912   ;;  %vm51_vm8 = vcmask 589312   ;;  %vm57_vm9 = vcmask 523712  }
   0xa   :  { %31 = vrot.lane.b32.xlu0 %v105_v4, %s135_s24  ;;  %37 = vrot.lane.b32.xlu1 %v106_v5, %s136_s25  ;;  %vm63_vm10 = vcmask 458112   ;;  %vm69_vm11 = vcmask 392512   ;;  %vm75_vm12 = vcmask 326912   ;;  %vm81_vm13 = vcmask 261312  }
   0xb   :  { %vm87_vm14 = vcmask 195712   ;;  %vm93_vm15 = vcmask 130112  }
   0xe   :  { %43 = vrot.lane.b32.xlu0 %v107_v7, %s137_s30  ;;  %49 = vrot.lane.b32.xlu1 %v108_v8, %s138_s2 }
  0x12   :  { %55 = vrot.lane.b32.xlu0 %v109_v9, %s139_s7  ;;  %61 = vrot.lane.b32.xlu1 %v110_v10, %s140_s8 }
  0x16   :  { %67 = vrot.lane.b32.xlu0 %v111_v11, %s141_s13  ;;  %73 = vrot.lane.b32.xlu1 %v112_v12, %s142_s14 }
  0x1a   :  { %79 = vrot.lane.b32.xlu0 %v113_v13, %s143_s19  ;;  %85 = vrot.lane.b32.xlu1 %v114_v14, %s144_s20 }
  0x1e   :  { %91 = vrot.lane.b32.xlu0 %v115_v15, %s145_s0 }
  0x74   :  { %v8_v16 = vpop.permute.xlu0 %7   ;;  %v20_v17 = vpop.permute.xlu1 %19  }
  0x75   :  { %10 = vst.msk [vmem:[#allocation0] sm:$0x1] %vm9_vm1, %v8_v16  }
  0x78   :  { %v14_v18 = vpop.permute.xlu0 %13   ;;  %v26_v19 = vpop.permute.xlu1 %25  }
  0x79   :  { %16 = vst.msk [vmem:[#allocation0] sm:$0x1] %vm15_vm2, %v14_v18  }
  0x7a   :  { %22 = vst.msk [vmem:[#allocation0] sm:$0x1] %vm21_vm3, %v20_v17  }
  0x7b   :  { %28 = vst.msk [vmem:[#allocation0] sm:$0x1] %vm27_vm4, %v26_v19  }
  0x7c   :  { %v32_v20 = vpop.permute.xlu0 %31   ;;  %v38_v21 = vpop.permute.xlu1 %37  }
  0x7d   :  { %34 = vst.msk [vmem:[#allocation0] sm:$0x1] %vm33_vm5, %v32_v20  }
  0x7e   :  { %40 = vst.msk [vmem:[#allocation0] sm:$0x1] %vm39_vm6, %v38_v21  }
  0x80   :  { %v44_v22 = vpop.permute.xlu0 %43   ;;  %v50_v23 = vpop.permute.xlu1 %49  }
  0x81   :  { %46 = vst.msk [vmem:[#allocation0] sm:$0x1] %vm45_vm7, %v44_v22  }
  0x82   :  { %52 = vst.msk [vmem:[#allocation0] sm:$0x1] %vm51_vm8, %v50_v23  }
  0x84   :  { %v56_v24 = vpop.permute.xlu0 %55   ;;  %v62_v25 = vpop.permute.xlu1 %61  }
  0x85   :  { %58 = vst.msk [vmem:[#allocation0] sm:$0x1] %vm57_vm9, %v56_v24  }
  0x86   :  { %64 = vst.msk [vmem:[#allocation0] sm:$0x1] %vm63_vm10, %v62_v25  }
  0x88   :  { %v68_v26 = vpop.permute.xlu0 %67   ;;  %v74_v27 = vpop.permute.xlu1 %73  }
  0x89   :  { %70 = vst.msk [vmem:[#allocation0] sm:$0x1] %vm69_vm11, %v68_v26  }
  0x8a   :  { %76 = vst.msk [vmem:[#allocation0] sm:$0x1] %vm75_vm12, %v74_v27  }
  0x8c   :  { %v80_v28 = vpop.permute.xlu0 %79   ;;  %v86_v29 = vpop.permute.xlu1 %85  }
  0x8d   :  { %82 = vst.msk [vmem:[#allocation0] sm:$0x1] %vm81_vm13, %v80_v28  }
  0x8e   :  { %88 = vst.msk [vmem:[#allocation0] sm:$0x1] %vm87_vm14, %v86_v29  }
  0x90   :  { %v92_v30 = vpop.permute.xlu0 %91  }
  0x91   :  { %94 = vst.msk [vmem:[#allocation0] sm:$0x1] %vm93_vm15, %v92_v30  }
  0x98   :  { %v98_v31 = vld [vmem:[#allocation0] sm:$0x1] }
  0x99   :  { %100 = vst [vmem:[%s208_s1] sm:$0x1] %v98_v31 }

// kernel: double_convolution.3
= control target key start
LH: loop header
LB: loop body
LE: loop exit
PB: predicated region body
PF: predicated region fallthrough
CT: control target
= control target key end

     0   :  { %v691_v1 = vmov 0.0   ;;  %s818_s3 = inlined_call_operand.vmem [shape: bf16[3,128,128], index: 3, kind: input, shape index: {}]   ;;  %s819_s0 = inlined_call_operand.vmem [shape: bf16[2,16,128], index: 0, kind: input, shape index: {}]   ;;  %s820_s1 = inlined_call_operand.vmem [shape: f32[1,128], index: 1, kind: input, shape index: {}]   ;;  %s821_s2 = inlined_call_operand.vmem [shape: f32[1,128], index: 2, kind: input, shape index: {}]   ;;  %s822_s4 = inlined_call_operand.vmem [shape: bf16[2,16,128], index: 4, kind: output, shape index: {0}]   ;;  %s823_s5 = inlined_call_operand.vmem [shape: f32[1,2,128], index: 5, kind: output, shape index: {1}]  }
   0x1   :  { %v667_v0 = vld [vmem:[%s818_s3] sm:$0xff]   ;;  %54 = vst [vmem:[#allocation2] sm:$0x1] %v691_v1  ;;  %55 = vst [vmem:[#allocation2 + $0x18] sm:$0x1] %v691_v1  ;;  %v668_v2 = vld [vmem:[%s818_s3 + $0x8] sm:$0xff]  }
   0x2   :  { %56 = vst [vmem:[#allocation2 + $0x11] sm:$0x1] %v691_v1  ;;  %57 = vst [vmem:[#allocation2 + $0x29] sm:$0x1] %v691_v1  ;;  %618 = vmatprep.subr.bf16.mxu0 %v667_v0  ;;  %v669_v3 = vld [vmem:[%s818_s3 + $0x10] sm:$0xff]   ;;  %v670_v4 = vld [vmem:[%s818_s3 + $0x18] sm:$0xff]  }
   0x3   :  { %619 = vmatpush3.bf16.msra.mxu0 %v667_v0  ;;  %v675_v5 = vld [vmem:[%s818_s3 + $0x40] sm:$0xff]   ;;  %v566_v7 = vld [vmem:[%s819_s0 + $0x8] sm:$0xff]   ;;  %v679_v24 = vld [vmem:[%s818_s3 + $0x50] sm:$0xff]  }
   0x4   :  { %620 = vmatprep.subr.bf16.mxu0 %v668_v2  ;;  %v549_v6 = vld [vmem:[%s819_s0] sm:$0xff]   ;;  %598 = vmatprep.subr.bf16.mxu1 %v675_v5  ;;  %v554_v12 = vunpack.c.l.bf16 %v566_v7  ;;  %v555_v13 = vunpack.c.h.bf16 %v566_v7  ;;  %v677_v17 = vld [vmem:[%s818_s3 + $0x48] sm:$0xff]   ;;  %v681_v30 = vld [vmem:[%s818_s3 + $0x58] sm:$0xff]  }
   0x5   :  { %v482_v8 = vld [vmem:[%s820_s1] ss:$0 sm:$0xff]  ;;  %v550_v10 = vunpack.c.l.bf16 %v549_v6  ;;  %v551_v11 = vunpack.c.h.bf16 %v549_v6  ;;  %599 = vmatpush3.bf16.msra.mxu1 %v675_v5  ;;  %v672_v25 = vld [vmem:[%s818_s3 + $0x28] sm:$0xff]   ;;  %v673_v32 = vld [vmem:[%s818_s3 + $0x30] sm:$0xff]  }
   0x6   :  { %v671_v9 = vld [vmem:[%s818_s3 + $0x20] sm:$0xff]   ;;  %v37_v18 = vmul.f32 %v554_v12, %v482_v8  ;;  %v38_v19 = vmul.f32 %v555_v13, %v482_v8  ;;  %600 = vmatprep.subr.bf16.mxu1 %v677_v17  ;;  %v674_v34 = vld [vmem:[%s818_s3 + $0x38] sm:$0xff]   ;;  %v685_v37 = vld [vmem:[%s818_s3 + $0x68] sm:$0xff]  }
   0x7   :  { %621 = vmatpush3.bf16.msra.mxu0 %v668_v2  ;;  %v483_v14 = vld [vmem:[%s821_s2] ss:$0 sm:$0xff]  ;;  %v35_v15 = vmul.f32 %v550_v10, %v482_v8  ;;  %v36_v16 = vmul.f32 %v551_v11, %v482_v8  ;;  %v687_v42 = vld [vmem:[%s818_s3 + $0x70] sm:$0xff]   ;;  %v678_v46 = vld [vmem:[%s818_s3 + $0x88] sm:$0xff]  }
   0x8   :  { %622 = vmatprep.subr.bf16.mxu0 %v669_v3  ;;  %v48_v22 = vadd.f32 %v483_v14, %v37_v18  ;;  %v49_v23 = vadd.f32 %v483_v14, %v38_v19  ;;  %v683_v33 = vld [vmem:[%s818_s3 + $0x60] sm:$0xff]   ;;  %v689_v47 = vld [vmem:[%s818_s3 + $0x78] sm:$0xff]   ;;  %v680_v49 = vld [vmem:[%s818_s3 + $0x90] sm:$0xff]  }
   0x9   :  { %v46_v20 = vadd.f32 %v483_v14, %v35_v15  ;;  %v47_v21 = vadd.f32 %v483_v14, %v36_v16  ;;  %601 = vmatpush3.bf16.msra.mxu1 %v677_v17  ;;  %v676_v41 = vld [vmem:[%s818_s3 + $0x80] sm:$0xff]   ;;  %v682_v51 = vld [vmem:[%s818_s3 + $0x98] sm:$0xff]   ;;  %v686_v53 = vld [vmem:[%s818_s3 + $0xa8] sm:$0xff]  }
   0xa   :  { %v52_v28 = vmax.f32 %v48_v22, 0.0  ;;  %v53_v29 = vmax.f32 %v49_v23, 0.0  ;;  %602 = vmatprep.subr.bf16.mxu1 %v679_v24  ;;  %v684_v52 = vld [vmem:[%s818_s3 + $0xa0] sm:$0xff]   ;;  %v688_v54 = vld [vmem:[%s818_s3 + $0xb0] sm:$0xff]   ;;  %v690_v55 = vld [vmem:[%s818_s3 + $0xb8] sm:$0xff]  }
   0xb   :  { %623 = vmatpush3.bf16.msra.mxu0 %v669_v3  ;;  %v50_v26 = vmax.f32 %v46_v20, 0.0  ;;  %v51_v27 = vmax.f32 %v47_v21, 0.0 }
   0xc   :  { %624 = vmatprep.subr.bf16.mxu0 %v670_v4  ;;  %60 = vst [vmem:[#allocation2 + $0x19] sm:$0xff] %v52_v28  ;;  %61 = vst [vmem:[#allocation2 + $0x21] sm:$0xff] %v53_v29  ;;  %v89_v50 = vpack.c.bf16 %v53_v29, %v52_v28 }
   0xd   :  { %58 = vst [vmem:[#allocation2 + $0x1] sm:$0xff] %v50_v26  ;;  %59 = vst [vmem:[#allocation2 + $0x9] sm:$0xff] %v51_v27  ;;  %v88_v31 = vpack.c.bf16 %v51_v27, %v50_v26  ;;  %603 = vmatpush3.bf16.msra.mxu1 %v679_v24 }
   0xe   :  { %604 = vmatprep.subr.bf16.mxu1 %v681_v30 }
   0xf   :  { %625 = vmatpush3.bf16.msra.mxu0 %v670_v4  ;;  %614 = vmatprep.mubr.bf16.mxu1 %v88_v31 }
  0x10   :  { %626 = vmatprep.subr.bf16.mxu0 %v671_v9 }
  0x11   :  { %605 = vmatpush3.bf16.msra.mxu1 %v681_v30 }
  0x12   :  { %606 = vmatprep.subr.bf16.mxu1 %v683_v33 }
  0x13   :  { %627 = vmatpush3.bf16.msra.mxu0 %v671_v9  ;;  %v64_v39 = vld [vmem:[#allocation2 + $0x18] sm:$0xff]  ;;  %v65_v40 = vld [vmem:[#allocation2 + $0x20] sm:$0xff] }
  0x14   :  { %628 = vmatprep.subr.bf16.mxu0 %v672_v25  ;;  %v62_v35 = vld [vmem:[#allocation2] sm:$0xff]  ;;  %v63_v36 = vld [vmem:[#allocation2 + $0x8] sm:$0xff]  ;;  %v67_v43 = vpack.c.bf16 %v65_v40, %v64_v39 }
  0x15   :  { %v66_v38 = vpack.c.bf16 %v63_v36, %v62_v35  ;;  %607 = vmatpush3.bf16.msra.mxu1 %v683_v33  ;;  %v301_v44 = vld [vmem:[#allocation2 + $0x2] sm:$0xff]  ;;  %v302_v45 = vld [vmem:[#allocation2 + $0xa] sm:$0xff]  ;;  %v303_v56 = vld [vmem:[#allocation2 + $0x1a] sm:$0xff] }
  0x16   :  { %608 = vmatprep.subr.bf16.mxu1 %v685_v37  ;;  %v305_v48 = vpack.c.bf16 %v302_v45, %v301_v44  ;;  %v304_v57 = vld [vmem:[#allocation2 + $0x22] sm:$0xff] }
  0x17   :  { %629 = vmatpush3.bf16.msra.mxu0 %v672_v25  ;;  %634 = vmatprep.mubr.bf16.mxu0 %v66_v38  ;;  %v306_v58 = vpack.c.bf16 %v304_v57, %v303_v56 }
  0x18   :  { %630 = vmatprep.subr.bf16.mxu0 %v673_v32 }
  0x19   :  { %609 = vmatpush3.bf16.msra.mxu1 %v685_v37 }
  0x1a   :  { %610 = vmatprep.subr.bf16.mxu1 %v687_v42 }
  0x1b   :  { %631 = vmatpush3.bf16.msra.mxu0 %v673_v32 }
  0x1c   :  { %632 = vmatprep.subr.bf16.mxu0 %v674_v34 }
  0x1d   :  { %611 = vmatpush3.bf16.msra.mxu1 %v687_v42 }
  0x1e   :  { %612 = vmatprep.subr.bf16.mxu1 %v689_v47 }
  0x1f   :  { %633 = vmatpush3.bf16.msra.mxu0 %v674_v34 }
  0x20   :  { %638 = vmatprep.subr.bf16.mxu0 %v676_v41 }
  0x21   :  { %613 = vmatpush3.bf16.msra.mxu1 %v689_v47 }
  0x22   :  { %635 = vmatmul.mubr.bf16.vlgmr.msra.gmra.mrb[0].mxu0 %v67_v43 }
  0x23   :  { %639 = vmatpush3.bf16.msra.mxu0 %v676_v41  ;;  %654 = vmatprep.mubr.bf16.mxu0 %v305_v48 }
  0x24   :  { %640 = vmatprep.subr.bf16.mxu0 %v678_v46  ;;  %615 = vmatmul.mubr.bf16.vlgmr.msra.gmra.mrb[0].mxu1 %v89_v50 }
  0x27   :  { %641 = vmatpush3.bf16.msra.mxu0 %v678_v46 }
  0x28   :  { %642 = vmatprep.subr.bf16.mxu0 %v680_v49 }
  0x2b   :  { %643 = vmatpush3.bf16.msra.mxu0 %v680_v49 }
  0x2c   :  { %644 = vmatprep.subr.bf16.mxu0 %v682_v51 }
  0x2f   :  { %645 = vmatpush3.bf16.msra.mxu0 %v682_v51 }
  0x30   :  { %646 = vmatprep.subr.bf16.mxu0 %v684_v52 }
  0x33   :  { %647 = vmatpush3.bf16.msra.mxu0 %v684_v52 }
  0x34   :  { %648 = vmatprep.subr.bf16.mxu0 %v686_v53 }
  0x37   :  { %649 = vmatpush3.bf16.msra.mxu0 %v686_v53 }
  0x38   :  { %650 = vmatprep.subr.bf16.mxu0 %v688_v54 }
  0x3b   :  { %651 = vmatpush3.bf16.msra.mxu0 %v688_v54 }
  0x3c   :  { %652 = vmatprep.subr.bf16.mxu0 %v690_v55 }
  0x3f   :  { %653 = vmatpush3.bf16.msra.mxu0 %v690_v55 }
  0x42   :  { %655 = vmatmul.mubr.bf16.vlgmr.msra.gmra.mrb[0].mxu0 %v306_v58 }
  0xf7   :  { %v616_v59 = vpop.f32.mrb[0].mxu1 }
  0xf8   :  { %v189_v60 = vpop.f32.mrb[1].mxu1 }
  0xf9   :  { %v617_v61 = vpop.f32.mrb[2].mxu1 }
  0xfa   :  { %v192_v62 = vpop.f32.mrb[3].mxu1 }
 0x115   :  { %v656_v63 = vpop.f32.mrb[0].mxu0 }
 0x116   :  { %v658_v0 = vadd.f32 %v656_v63, %v616_v59  ;;  %v406_v1 = vpop.f32.mrb[1].mxu0 }
 0x117   :  { %v659_v2 = vadd.f32 %v406_v1, %v189_v60  ;;  %v657_v3 = vpop.f32.mrb[2].mxu0 }
 0x118   :  { %v660_v4 = vadd.f32 %v657_v3, %v617_v61  ;;  %v409_v5 = vpop.f32.mrb[3].mxu0 }
 0x119   :  { %v661_v6 = vadd.f32 %v409_v5, %v192_v62 }
 0x11a   :  { %v564_v7 = vpack.c.bf16 %v660_v4, %v658_v0 }
 0x11b   :  { %v559_v8 = vpack.c.bf16 %v661_v6, %v659_v2  ;;  %v445_v9 = vadd.f32 %v661_v6, %v659_v2 }
 0x11c   :  { %567 = vst [vmem:[%s822_s4 + $0x8] sm:$0xff] %v564_v7  }
 0x11d   :  { %560 = vst [vmem:[%s822_s4] sm:$0xff] %v559_v8   ;;  %v446_v10 = vadd.f32 %v658_v0, %v445_v9 }
 0x11f   :  { %v447_v11 = vadd.f32 %v660_v4, %v446_v10 }
 0x121   :  { %v448_v12 = vrot.slane %v447_v11, 4 }
 0x123   :  { %v449_v13 = vadd.f32 %v448_v12, %v447_v11 }
 0x125   :  { %v450_v14 = vrot.slane %v449_v13, 2 }
 0x127   :  { %v451_v15 = vadd.f32 %v450_v14, %v449_v13 }
 0x129   :  { %v452_v16 = vrot.slane %v451_v15, 1 }
 0x12b   :  { %v453_v17 = vadd.f32 %v452_v16, %v451_v15 }
 0x12d   :  { %v454_v18 = vmul.f32 0.03125, %v453_v17 }
 0x12f   :  { %v455_v19 = vsub.f32 %v659_v2, %v454_v18  ;;  %v456_v20 = vsub.f32 %v661_v6, %v454_v18  ;;  %v457_v21 = vsub.f32 %v658_v0, %v454_v18  ;;  %v458_v22 = vsub.f32 %v660_v4, %v454_v18  ;;  %472 = vst [vmem:[%s823_s5] sm:$0x1] %v454_v18 }
 0x131   :  { %v459_v23 = vmul.f32 %v455_v19, %v455_v19  ;;  %v460_v24 = vmul.f32 %v456_v20, %v456_v20  ;;  %v461_v25 = vmul.f32 %v457_v21, %v457_v21  ;;  %v462_v27 = vmul.f32 %v458_v22, %v458_v22 }
 0x133   :  { %v463_v26 = vadd.f32 %v460_v24, %v459_v23 }
 0x135   :  { %v464_v28 = vadd.f32 %v463_v26, %v461_v25 }
 0x137   :  { %v465_v29 = vadd.f32 %v464_v28, %v462_v27 }
 0x139   :  { %v466_v30 = vrot.slane %v465_v29, 4 }
 0x13b   :  { %v467_v31 = vadd.f32 %v466_v30, %v465_v29 }
 0x13d   :  { %v468_v32 = vrot.slane %v467_v31, 2 }
 0x13f   :  { %v469_v33 = vadd.f32 %v468_v32, %v467_v31 }
 0x141   :  { %v470_v34 = vrot.slane %v469_v33, 1 }
 0x143   :  { %v471_v35 = vadd.f32 %v470_v34, %v469_v33 }
 0x145   :  { %473 = vst [vmem:[%s823_s5 + $0x1] sm:$0x1] %v471_v35 }

</bundles_post_ra>
